<compile_context>
chip_gen: v6e
topology: v6e:2x2x1
jax: 0.10.0
libtpu: 0.0.40
codegen_flags: <defaults>
</compile_context>

<pallas_src>
import jax
import jax.numpy as jnp
from jax import lax
from jax.experimental import pallas as pl
from jax.experimental.pallas import tpu as pltpu

# ----------------------------- configuration -------------------------------
B = 2          # batch
DIM = 32       # input/output channels (`dim`)
N = 16         # sequence length
HEADS = 4
DIM_HEAD = 32
HIDDEN = HEADS * DIM_HEAD          # 128
SCALE = DIM_HEAD ** (-0.5)
BH = B * HEADS

# batched matmul dimension_numbers: contract lhs dim `lc` with rhs dim `rc`,
# batch over the leading axis of both operands.
_BMM = lambda lc, rc: (((lc,), (rc,)), ((0,), (0,)))


# ------------------------------- kernel ------------------------------------
def attention_kernel(x_ref, wq_ref, wk_ref, wv_ref, wo_ref, b_ref, o_ref):
    # x_ref:        (B, N, DIM)           bf16
    # wq/wk/wv_ref: (H, DIM, DIM_HEAD)    bf16
    # wo_ref:       (H, DIM_HEAD, DIM)    bf16
    # b_ref:        (1, DIM)              f32
    # o_ref:        (B, N, DIM)           f32
    x = x_ref[...]

    # Put (batch, head) on a leading batch axis so every stage is a single
    # batched dot_general.  Broadcast/reshape only touch outer dims (cheap).
    x_bh = jnp.broadcast_to(x[:, None], (B, HEADS, N, DIM)).reshape(BH, N, DIM)

    def per_head(w_ref):  # (H, A, C) -> (B*H, A, C), replicated across batch
        w = w_ref[...]
        return jnp.broadcast_to(w[None], (B,) + w.shape).reshape((BH,) + w.shape[1:])

    wq, wk, wv, wo = map(per_head, (wq_ref, wk_ref, wv_ref, wo_ref))

    proj = _BMM(2, 1)
    q = lax.dot_general(x_bh, wq, proj, preferred_element_type=jnp.float32)  # (BH,N,d)
    k = lax.dot_general(x_bh, wk, proj, preferred_element_type=jnp.float32)
    v = lax.dot_general(x_bh, wv, proj, preferred_element_type=jnp.float32)

    q = (q * SCALE).astype(jnp.bfloat16)          # one whole-slab multiply
    k = k.astype(jnp.bfloat16)
    v = v.astype(jnp.bfloat16)

    # sim[bh, i, j] = sum_d q[bh, i, d] * k[bh, j, d]   (no explicit k.T)
    sim = lax.dot_general(q, k, _BMM(2, 2),
                          preferred_element_type=jnp.float32)                # (BH,N,N)

    # numerically stable softmax over j
    sim = sim - jnp.max(sim, axis=-1, keepdims=True)
    e = jnp.exp(sim)
    denom = jnp.sum(e, axis=-1, keepdims=True)
    attn = (e * pl.reciprocal(denom, approx=True)).astype(jnp.bfloat16)

    out = lax.dot_general(attn, v, _BMM(2, 1),
                          preferred_element_type=jnp.float32)                # (BH,N,d)

    # output projection folded per head (no lane-axis concat), sum over heads
    y_h = lax.dot_general(out.astype(jnp.bfloat16), wo, _BMM(2, 1),
                          preferred_element_type=jnp.float32)                # (BH,N,DIM)
    y = jnp.sum(y_h.reshape(B, HEADS, N, DIM), axis=1) + b_ref[...]          # (B,N,DIM)
    o_ref[...] = y.astype(o_ref.dtype)


# ------------------------------- wrapper ------------------------------------
@jax.jit
def attention_pallas(x_ncw, w_qkv, w_out, b_out):
    """x_ncw: (B, DIM, N) float32 -> (B, DIM, N) float32."""
    x_nlc = jnp.transpose(x_ncw, (0, 2, 1)).astype(jnp.bfloat16)      # (B, N, DIM)

    # Per-head weight layout: heads on a leading axis, channels on lanes.
    # w_qkv rows are ordered [q | k | v], each block indexed by (h*d + c).
    wq = w_qkv[:HIDDEN].reshape(HEADS, DIM_HEAD, DIM).transpose(0, 2, 1)       # (H,DIM,d)
    wk = w_qkv[HIDDEN:2 * HIDDEN].reshape(HEADS, DIM_HEAD, DIM).transpose(0, 2, 1)
    wv = w_qkv[2 * HIDDEN:].reshape(HEADS, DIM_HEAD, DIM).transpose(0, 2, 1)
    wo = w_out.T.reshape(HEADS, DIM_HEAD, DIM)                                 # (H,d,DIM)
    wq, wk, wv, wo = (w.astype(jnp.bfloat16) for w in (wq, wk, wv, wo))
    b2d = b_out.reshape(1, DIM).astype(jnp.float32)

    out_nlc = pl.pallas_call(
        attention_kernel,
        out_shape=jax.ShapeDtypeStruct((B, N, DIM), jnp.float32),
        grid_spec=pltpu.PrefetchScalarGridSpec(
            num_scalar_prefetch=0,
            grid=(1,),   # single step: whole problem (<100 KB) fits in VMEM
            in_specs=[
                pl.BlockSpec((B, N, DIM), lambda i: (0, 0, 0)),
                pl.BlockSpec((HEADS, DIM, DIM_HEAD), lambda i: (0, 0, 0)),
                pl.BlockSpec((HEADS, DIM, DIM_HEAD), lambda i: (0, 0, 0)),
                pl.BlockSpec((HEADS, DIM, DIM_HEAD), lambda i: (0, 0, 0)),
                pl.BlockSpec((HEADS, DIM_HEAD, DIM), lambda i: (0, 0, 0)),
                pl.BlockSpec((1, DIM), lambda i: (0, 0)),
            ],
            out_specs=pl.BlockSpec((B, N, DIM), lambda i: (0, 0, 0)),
        ),
        compiler_params=pltpu.CompilerParams(
            dimension_semantics=("arbitrary",)),
        # TODO(synk): on v7x (2 TensorCores) a 2-way "parallel" grid axis over
        # the batch would halve latency; kept single-step for v5e/v6e.
    )(x_nlc, wq, wk, wv, wo, b2d)

    return jnp.transpose(out_nlc, (0, 2, 1))                           # (B, DIM, N)


# ---------------------------- pure-JAX reference ----------------------------
def attention_ref(x_ncw, w_qkv, w_out, b_out):
    # Mirrors the PyTorch forward exactly (NCW layout), full f32.
    qkv = jnp.einsum('oc,bcn->bon', w_qkv, x_ncw)            # (B, 3*HIDDEN, N)
    q, k, v = jnp.split(qkv, 3, axis=1)
    reshape = lambda t: t.reshape(B, HEADS, DIM_HEAD, N)     # b (h c) n -> b h c n
    q, k, v = map(reshape, (q, k, v))
    q = q * SCALE
    sim = jnp.einsum('bhdi,bhdj->bhij', q, k)
    attn = jax.nn.softmax(sim, axis=-1)
    out = jnp.einsum('bhij,bhdj->bhid', attn, v)             # (B, H, N, d)
    out = jnp.transpose(out, (0, 1, 3, 2)).reshape(B, HIDDEN, N)  # b h n d -> b (h d) n
    return jnp.einsum('oc,bcn->bon', w_out, out) + b_out[None, :, None]


# --------------------------------- main -------------------------------------
if __name__ == "__main__":
    key = jax.random.PRNGKey(0)
    kx, k1, k2, k3 = jax.random.split(key, 4)

    x = jax.random.normal(kx, (B, DIM, N), dtype=jnp.float32)

    # Deterministic synthetic parameters (shapes match nn.Conv1d with k=1).
    fan_qkv = DIM
    fan_out = HIDDEN
    w_qkv = jax.random.uniform(k1, (3 * HIDDEN, DIM), jnp.float32,
                               -1.0 / fan_qkv ** 0.5, 1.0 / fan_qkv ** 0.5)
    w_out = jax.random.uniform(k2, (DIM, HIDDEN), jnp.float32,
                               -1.0 / fan_out ** 0.5, 1.0 / fan_out ** 0.5)
    b_out = jax.random.uniform(k3, (DIM,), jnp.float32,
                               -1.0 / fan_out ** 0.5, 1.0 / fan_out ** 0.5)

    y = attention_pallas(x, w_qkv, w_out, b_out)
    jax.block_until_ready(y)

    y_ref = attention_ref(x, w_qkv, w_out, b_out)
    assert y.shape == (B, DIM, N)
    max_err = float(jnp.max(jnp.abs(y - y_ref)))
    # bf16 MXU inputs with f32 accumulation -> relaxed tolerance vs f32 ref.
    assert jnp.allclose(y, y_ref, atol=3e-2, rtol=3e-2), \
        f"max abs err = {max_err}"

    print("KERNEL_OK")
</pallas_src>

<mosaic_0001>
module attributes {stable_mosaic.version = 11 : i64} {
  func.func @attention_kernel(%arg0: i32, %arg1: memref<2x16x32xbf16, #tpu.memory_space<vmem>>, %arg2: memref<4x32x32xbf16, #tpu.memory_space<vmem>>, %arg3: memref<4x32x32xbf16, #tpu.memory_space<vmem>>, %arg4: memref<4x32x32xbf16, #tpu.memory_space<vmem>>, %arg5: memref<4x32x32xbf16, #tpu.memory_space<vmem>>, %arg6: memref<1x32xf32, #tpu.memory_space<vmem>>, %arg7: memref<2x16x32xf32, #tpu.memory_space<vmem>>) attributes {dimension_semantics = [#tpu.dimension_semantics<arbitrary>], iteration_bounds = array<i64: 1>, scalar_prefetch = 0 : i64, scratch_operands = 0 : i64, tpu.core_type = #tpu.core_type<tc>, window_params = [{pipeline_mode = #tpu.pipeline_mode<synchronous>, transform_indices = @transform_0, window_bounds = array<i64: 2, 16, 32>}, {pipeline_mode = #tpu.pipeline_mode<synchronous>, transform_indices = @transform_1, window_bounds = array<i64: 4, 32, 32>}, {pipeline_mode = #tpu.pipeline_mode<synchronous>, transform_indices = @transform_2, window_bounds = array<i64: 4, 32, 32>}, {pipeline_mode = #tpu.pipeline_mode<synchronous>, transform_indices = @transform_3, window_bounds = array<i64: 4, 32, 32>}, {pipeline_mode = #tpu.pipeline_mode<synchronous>, transform_indices = @transform_4, window_bounds = array<i64: 4, 32, 32>}, {pipeline_mode = #tpu.pipeline_mode<synchronous>, transform_indices = @transform_5, window_bounds = array<i64: 1, 32>}, {pipeline_mode = #tpu.pipeline_mode<synchronous>, transform_indices = @transform_6, window_bounds = array<i64: 2, 16, 32>}]} {
    %c0 = arith.constant 0 : index
    %c0_0 = arith.constant 0 : index
    %c0_1 = arith.constant 0 : index
    %0 = vector.load %arg1[%c0, %c0_0, %c0_1] : memref<2x16x32xbf16, #tpu.memory_space<vmem>>, vector<2x16x32xbf16>
    %1 = vector.shape_cast %0 : vector<2x16x32xbf16> to vector<2x1x16x32xbf16>
    %2 = vector.shape_cast %1 : vector<2x1x16x32xbf16> to vector<2x1x16x32xbf16>
    %3 = vector.broadcast %2 : vector<2x1x16x32xbf16> to vector<2x4x16x32xbf16>
    %4 = vector.shape_cast %3 : vector<2x4x16x32xbf16> to vector<8x16x32xbf16>
    %c0_2 = arith.constant 0 : index
    %c0_3 = arith.constant 0 : index
    %c0_4 = arith.constant 0 : index
    %5 = vector.load %arg2[%c0_2, %c0_3, %c0_4] : memref<4x32x32xbf16, #tpu.memory_space<vmem>>, vector<4x32x32xbf16>
    %6 = vector.shape_cast %5 : vector<4x32x32xbf16> to vector<1x4x32x32xbf16>
    %7 = vector.shape_cast %6 : vector<1x4x32x32xbf16> to vector<1x4x32x32xbf16>
    %8 = vector.broadcast %7 : vector<1x4x32x32xbf16> to vector<2x4x32x32xbf16>
    %9 = vector.shape_cast %8 : vector<2x4x32x32xbf16> to vector<8x32x32xbf16>
    %c0_5 = arith.constant 0 : index
    %c0_6 = arith.constant 0 : index
    %c0_7 = arith.constant 0 : index
    %10 = vector.load %arg3[%c0_5, %c0_6, %c0_7] : memref<4x32x32xbf16, #tpu.memory_space<vmem>>, vector<4x32x32xbf16>
    %11 = vector.shape_cast %10 : vector<4x32x32xbf16> to vector<1x4x32x32xbf16>
    %12 = vector.shape_cast %11 : vector<1x4x32x32xbf16> to vector<1x4x32x32xbf16>
    %13 = vector.broadcast %12 : vector<1x4x32x32xbf16> to vector<2x4x32x32xbf16>
    %14 = vector.shape_cast %13 : vector<2x4x32x32xbf16> to vector<8x32x32xbf16>
    %c0_8 = arith.constant 0 : index
    %c0_9 = arith.constant 0 : index
    %c0_10 = arith.constant 0 : index
    %15 = vector.load %arg4[%c0_8, %c0_9, %c0_10] : memref<4x32x32xbf16, #tpu.memory_space<vmem>>, vector<4x32x32xbf16>
    %16 = vector.shape_cast %15 : vector<4x32x32xbf16> to vector<1x4x32x32xbf16>
    %17 = vector.shape_cast %16 : vector<1x4x32x32xbf16> to vector<1x4x32x32xbf16>
    %18 = vector.broadcast %17 : vector<1x4x32x32xbf16> to vector<2x4x32x32xbf16>
    %19 = vector.shape_cast %18 : vector<2x4x32x32xbf16> to vector<8x32x32xbf16>
    %c0_11 = arith.constant 0 : index
    %c0_12 = arith.constant 0 : index
    %c0_13 = arith.constant 0 : index
    %20 = vector.load %arg5[%c0_11, %c0_12, %c0_13] : memref<4x32x32xbf16, #tpu.memory_space<vmem>>, vector<4x32x32xbf16>
    %21 = vector.shape_cast %20 : vector<4x32x32xbf16> to vector<1x4x32x32xbf16>
    %22 = vector.shape_cast %21 : vector<1x4x32x32xbf16> to vector<1x4x32x32xbf16>
    %23 = vector.broadcast %22 : vector<1x4x32x32xbf16> to vector<2x4x32x32xbf16>
    %24 = vector.shape_cast %23 : vector<2x4x32x32xbf16> to vector<8x32x32xbf16>
    %cst = arith.constant dense<0.000000e+00> : vector<8x16x32xf32>
    %25 = tpu.matmul %4, %9, %cst {dimension_numbers = #tpu.dot_dimension_numbers<[2], [1], [1], [2], [0, 0, 0, 1, 1, 2], [0], [0]>} : vector<8x16x32xbf16>, vector<8x32x32xbf16>, vector<8x16x32xf32> -> vector<8x16x32xf32>
    %cst_14 = arith.constant dense<0.000000e+00> : vector<8x16x32xf32>
    %26 = tpu.matmul %4, %14, %cst_14 {dimension_numbers = #tpu.dot_dimension_numbers<[2], [1], [1], [2], [0, 0, 0, 1, 1, 2], [0], [0]>} : vector<8x16x32xbf16>, vector<8x32x32xbf16>, vector<8x16x32xf32> -> vector<8x16x32xf32>
    %cst_15 = arith.constant dense<0.000000e+00> : vector<8x16x32xf32>
    %27 = tpu.matmul %4, %19, %cst_15 {dimension_numbers = #tpu.dot_dimension_numbers<[2], [1], [1], [2], [0, 0, 0, 1, 1, 2], [0], [0]>} : vector<8x16x32xbf16>, vector<8x32x32xbf16>, vector<8x16x32xf32> -> vector<8x16x32xf32>
    %cst_16 = arith.constant 0.176776692 : f32
    %28 = vector.broadcast %cst_16 : f32 to vector<8x16x32xf32>
    %29 = arith.mulf %25, %28 : vector<8x16x32xf32>
    %30 = arith.truncf %29 : vector<8x16x32xf32> to vector<8x16x32xbf16>
    %31 = arith.truncf %26 : vector<8x16x32xf32> to vector<8x16x32xbf16>
    %32 = arith.truncf %27 : vector<8x16x32xf32> to vector<8x16x32xbf16>
    %cst_17 = arith.constant dense<0.000000e+00> : vector<8x16x16xf32>
    %33 = tpu.matmul %30, %31, %cst_17 {dimension_numbers = #tpu.dot_dimension_numbers<[2], [2], [1], [1], [0, 0, 0, 1, 1, 1], [0], [0]>} : vector<8x16x32xbf16>, vector<8x16x32xbf16>, vector<8x16x16xf32> -> vector<8x16x16xf32>
    %cst_18 = arith.constant dense<0xFF800000> : vector<8x16xf32>
    %34 = vector.multi_reduction <maximumf>, %33, %cst_18 [2] : vector<8x16x16xf32> to vector<8x16xf32>
    %35 = vector.shape_cast %34 : vector<8x16xf32> to vector<8x16x1xf32>
    %36 = vector.broadcast %35 : vector<8x16x1xf32> to vector<8x16x16xf32>
    %37 = arith.subf %33, %36 : vector<8x16x16xf32>
    %38 = math.exp %37 : vector<8x16x16xf32>
    %cst_19 = arith.constant dense<0.000000e+00> : vector<8x16xf32>
    %39 = vector.multi_reduction <add>, %38, %cst_19 [2] : vector<8x16x16xf32> to vector<8x16xf32>
    %40 = vector.shape_cast %39 : vector<8x16xf32> to vector<8x16x1xf32>
    %41 = tpu.reciprocal %40 {approx = true} : vector<8x16x1xf32> -> vector<8x16x1xf32>
    %42 = vector.broadcast %41 : vector<8x16x1xf32> to vector<8x16x16xf32>
    %43 = arith.mulf %38, %42 : vector<8x16x16xf32>
    %44 = arith.truncf %43 : vector<8x16x16xf32> to vector<8x16x16xbf16>
    %cst_20 = arith.constant dense<0.000000e+00> : vector<8x16x32xf32>
    %45 = tpu.matmul %44, %32, %cst_20 {dimension_numbers = #tpu.dot_dimension_numbers<[2], [1], [1], [2], [0, 0, 0, 1, 1, 2], [0], [0]>} : vector<8x16x16xbf16>, vector<8x16x32xbf16>, vector<8x16x32xf32> -> vector<8x16x32xf32>
    %46 = arith.truncf %45 : vector<8x16x32xf32> to vector<8x16x32xbf16>
    %cst_21 = arith.constant dense<0.000000e+00> : vector<8x16x32xf32>
    %47 = tpu.matmul %46, %24, %cst_21 {dimension_numbers = #tpu.dot_dimension_numbers<[2], [1], [1], [2], [0, 0, 0, 1, 1, 2], [0], [0]>} : vector<8x16x32xbf16>, vector<8x32x32xbf16>, vector<8x16x32xf32> -> vector<8x16x32xf32>
    %48 = vector.shape_cast %47 : vector<8x16x32xf32> to vector<2x4x16x32xf32>
    %cst_22 = arith.constant dense<0.000000e+00> : vector<2x16x32xf32>
    %49 = vector.multi_reduction <add>, %48, %cst_22 [1] : vector<2x4x16x32xf32> to vector<2x16x32xf32>
    %c0_23 = arith.constant 0 : index
    %c0_24 = arith.constant 0 : index
    %50 = vector.load %arg6[%c0_23, %c0_24] : memref<1x32xf32, #tpu.memory_space<vmem>>, vector<1x32xf32>
    %51 = vector.shape_cast %50 : vector<1x32xf32> to vector<1x1x32xf32>
    %52 = vector.broadcast %51 : vector<1x1x32xf32> to vector<2x16x32xf32>
    %53 = arith.addf %49, %52 : vector<2x16x32xf32>
    %c0_25 = arith.constant 0 : index
    %c0_26 = arith.constant 0 : index
    %c0_27 = arith.constant 0 : index
    %54 = vector.load %arg7[%c0_25, %c0_26, %c0_27] : memref<2x16x32xf32, #tpu.memory_space<vmem>>, vector<2x16x32xf32>
    tpu.vector_store %arg7[%c0_25, %c0_26, %c0_27], %53 {strides = array<i32>} : memref<2x16x32xf32, #tpu.memory_space<vmem>>, vector<2x16x32xf32>,
    return
  }
  func.func @transform_0(%arg0: i32) -> (i32, i32, i32) {
    %c0_i32 = arith.constant 0 : i32
    %c0_i32_0 = arith.constant 0 : i32
    %c0_i32_1 = arith.constant 0 : i32
    %c0_i32_2 = arith.constant 0 : i32
    return %c0_i32, %c0_i32_0, %c0_i32_1 : i32, i32, i32
  }
  func.func @transform_1(%arg0: i32) -> (i32, i32, i32) {
    %c0_i32 = arith.constant 0 : i32
    %c0_i32_0 = arith.constant 0 : i32
    %c0_i32_1 = arith.constant 0 : i32
    %c0_i32_2 = arith.constant 0 : i32
    return %c0_i32, %c0_i32_0, %c0_i32_1 : i32, i32, i32
  }
  func.func @transform_2(%arg0: i32) -> (i32, i32, i32) {
    %c0_i32 = arith.constant 0 : i32
    %c0_i32_0 = arith.constant 0 : i32
    %c0_i32_1 = arith.constant 0 : i32
    %c0_i32_2 = arith.constant 0 : i32
    return %c0_i32, %c0_i32_0, %c0_i32_1 : i32, i32, i32
  }
  func.func @transform_3(%arg0: i32) -> (i32, i32, i32) {
    %c0_i32 = arith.constant 0 : i32
    %c0_i32_0 = arith.constant 0 : i32
    %c0_i32_1 = arith.constant 0 : i32
    %c0_i32_2 = arith.constant 0 : i32
    return %c0_i32, %c0_i32_0, %c0_i32_1 : i32, i32, i32
  }
  func.func @transform_4(%arg0: i32) -> (i32, i32, i32) {
    %c0_i32 = arith.constant 0 : i32
    %c0_i32_0 = arith.constant 0 : i32
    %c0_i32_1 = arith.constant 0 : i32
    %c0_i32_2 = arith.constant 0 : i32
    return %c0_i32, %c0_i32_0, %c0_i32_1 : i32, i32, i32
  }
  func.func @transform_5(%arg0: i32) -> (i32, i32) {
    %c0_i32 = arith.constant 0 : i32
    %c0_i32_0 = arith.constant 0 : i32
    %c0_i32_1 = arith.constant 0 : i32
    return %c0_i32, %c0_i32_0 : i32, i32
  }
  func.func @transform_6(%arg0: i32) -> (i32, i32, i32) {
    %c0_i32 = arith.constant 0 : i32
    %c0_i32_0 = arith.constant 0 : i32
    %c0_i32_1 = arith.constant 0 : i32
    %c0_i32_2 = arith.constant 0 : i32
    return %c0_i32, %c0_i32_0, %c0_i32_1 : i32, i32, i32
  }
}

</mosaic_0001>

<bundles_post_ra>
// kernel: attention_pallas.1
= control target key start
LH: loop header
LB: loop body
LE: loop exit
PB: predicated region body
PF: predicated region fallthrough
CT: control target
= control target key end

     0   :  { %v3346_v1 = vmov 0.0   ;;  %vm3347_vm0 = vmmov 0   ;;  %vm110_vm1 = vcmask 261120   ;;  %s4018_s0 = inlined_call_operand.vmem [shape: bf16[2,16,32], index: 0, kind: input, shape index: {}]   ;;  %s4019_s1 = inlined_call_operand.vmem [shape: bf16[4,32,32], index: 1, kind: input, shape index: {}]   ;;  %s4020_s2 = inlined_call_operand.vmem [shape: bf16[4,32,32], index: 2, kind: input, shape index: {}]   ;;  %s4021_s3 = inlined_call_operand.vmem [shape: bf16[4,32,32], index: 3, kind: input, shape index: {}]   ;;  %s4022_s4 = inlined_call_operand.vmem [shape: bf16[4,32,32], index: 4, kind: input, shape index: {}]   ;;  %s4023_s5 = inlined_call_operand.vmem [shape: f32[1,32], index: 5, kind: input, shape index: {}]   ;;  %s4024_s6 = inlined_call_operand.hbm [shape: f32[2,16,32], index: 6, kind: output, shape index: {}]  }
   0x1   :  { %v3226_v0 = vld [vmem:[%s4019_s1 + $0x8] sm:$0xff]   ;;  %2869 = vmatprep.subr.bf16.mxu0 %v3346_v1  ;;  %2877 = vmatprep.subr.bf16.mxu1 %v3346_v1  ;;  %v3227_v2 = vld [vmem:[%s4019_s1 + $0x18] sm:$0xff]   ;;  %v3228_v3 = vld [vmem:[%s4019_s1] sm:$0xff]  }
   0x2   :  { %2870 = vmatpush3.bf16.msra.mxu0 %v3226_v0  ;;  %2873 = vmatprep.mubr.msk.bf16.mxu0 %vm3347_vm0, %v3346_v1  ;;  %v3229_v4 = vld [vmem:[%s4019_s1 + $0x10] sm:$0xff]   ;;  %v3409_v5 = vld [vmem:[%s4018_s0] sm:$0xff]   ;;  %v3231_v6 = vld [vmem:[%s4019_s1 + $0x28] sm:$0xff]  }
   0x3   :  { %2878 = vmatpush3.bf16.msra.mxu1 %v3227_v2  ;;  %2871 = vmatprep.subr.bf16.mxu0 %v3346_v1  ;;  %v3232_v7 = vld [vmem:[%s4019_s1 + $0x38] sm:$0xff]   ;;  %v3233_v8 = vld [vmem:[%s4019_s1 + $0x20] sm:$0xff]   ;;  %v3234_v9 = vld [vmem:[%s4019_s1 + $0x30] sm:$0xff]  }
   0x4   :  { %2879 = vmatprep.subr.bf16.mxu1 %v3346_v1  ;;  %2881 = vmatprep.mubr.msk.bf16.mxu1 %vm3347_vm0, %v3346_v1  ;;  %v3445_v10 = vld [vmem:[%s4018_s0 + $0x8] sm:$0xff]  }
   0x6   :  { %2872 = vmatpush3.bf16.msra.mxu0 %v3228_v3 }
   0x7   :  { %2880 = vmatpush3.bf16.msra.mxu1 %v3229_v4  ;;  %2885 = vmatprep.subr.bf16.mxu0 %v3346_v1 }
   0x8   :  { %2893 = vmatprep.subr.bf16.mxu1 %v3346_v1 }
   0x9   :  { %2874 = vmatmul.mubr.msk.bf16.vlgmr.msra.gmra.mxu0 %vm110_vm1, %v3409_v5 }
   0xa   :  { %2882 = vmatmul.mubr.msk.bf16.vlgmr.msra.gmra.mxu1 %vm110_vm1, %v3409_v5  ;;  %2886 = vmatpush3.bf16.msra.mxu0 %v3231_v6 }
   0xb   :  { %2894 = vmatpush3.bf16.msra.mxu1 %v3232_v7  ;;  %2887 = vmatprep.subr.bf16.mxu0 %v3346_v1 }
   0xc   :  { %2895 = vmatprep.subr.bf16.mxu1 %v3346_v1  ;;  %2889 = vmatprep.mubr.msk.bf16.mxu0 %vm3347_vm0, %v3346_v1 }
   0xd   :  { %2897 = vmatprep.mubr.msk.bf16.mxu1 %vm3347_vm0, %v3346_v1 }
   0xe   :  { %2888 = vmatpush3.bf16.msra.mxu0 %v3233_v8 }
   0xf   :  { %2896 = vmatpush3.bf16.msra.mxu1 %v3234_v9  ;;  %2901 = vmatprep.subr.bf16.mxu0 %v3346_v1 }
  0x10   :  { %2909 = vmatprep.subr.bf16.mxu1 %v3346_v1 }
  0x11   :  { %2890 = vmatmul.mubr.msk.bf16.vlgmr.msra.gmra.mxu0 %vm110_vm1, %v3409_v5 }
  0x12   :  { %2898 = vmatmul.mubr.msk.bf16.vlgmr.msra.gmra.mxu1 %vm110_vm1, %v3409_v5  ;;  %2902 = vmatpush3.bf16.msra.mxu0 %v3226_v0 }
  0x13   :  { %2910 = vmatpush3.bf16.msra.mxu1 %v3227_v2  ;;  %2903 = vmatprep.subr.bf16.mxu0 %v3346_v1 }
  0x14   :  { %2911 = vmatprep.subr.bf16.mxu1 %v3346_v1  ;;  %2905 = vmatprep.mubr.msk.bf16.mxu0 %vm3347_vm0, %v3346_v1 }
  0x15   :  { %2913 = vmatprep.mubr.msk.bf16.mxu1 %vm3347_vm0, %v3346_v1 }
  0x16   :  { %2904 = vmatpush3.bf16.msra.mxu0 %v3228_v3 }
  0x17   :  { %2912 = vmatpush3.bf16.msra.mxu1 %v3229_v4  ;;  %2917 = vmatprep.subr.bf16.mxu0 %v3346_v1 }
  0x18   :  { %2925 = vmatprep.subr.bf16.mxu1 %v3346_v1 }
  0x19   :  { %2906 = vmatmul.mubr.msk.bf16.vlgmr.msra.gmra.mxu0 %vm110_vm1, %v3445_v10 }
  0x1a   :  { %2914 = vmatmul.mubr.msk.bf16.vlgmr.msra.gmra.mxu1 %vm110_vm1, %v3445_v10  ;;  %2918 = vmatpush3.bf16.msra.mxu0 %v3231_v6 }
  0x1b   :  { %2926 = vmatpush3.bf16.msra.mxu1 %v3232_v7  ;;  %2919 = vmatprep.subr.bf16.mxu0 %v3346_v1 }
  0x1c   :  { %2927 = vmatprep.subr.bf16.mxu1 %v3346_v1  ;;  %2921 = vmatprep.mubr.msk.bf16.mxu0 %vm3347_vm0, %v3346_v1 }
  0x1d   :  { %11 = vsyncpa [#allocation3], 0  ;;  %2929 = vmatprep.mubr.msk.bf16.mxu1 %vm3347_vm0, %v3346_v1  ;;  %v3236_v11 = vld [vmem:[%s4020_s2 + $0x8] sm:$0xff]   ;;  %v3237_v12 = vld [vmem:[%s4020_s2 + $0x18] sm:$0xff]   ;;  %vm1654_vm2 = vcmask 130048  }
  0x1e   :  { %2920 = vmatpush3.bf16.msra.mxu0 %v3233_v8  ;;  %v3238_v13 = vld [vmem:[%s4020_s2] sm:$0xff]   ;;  %v3239_v14 = vld [vmem:[%s4020_s2 + $0x10] sm:$0xff]   ;;  %v3240_v15 = vld [vmem:[%s4020_s2 + $0x28] sm:$0xff]  }
  0x1f   :  { %2928 = vmatpush3.bf16.msra.mxu1 %v3234_v9  ;;  %2933 = vmatprep.subr.bf16.mxu0 %v3346_v1  ;;  %v3241_v16 = vld [vmem:[%s4020_s2 + $0x38] sm:$0xff]   ;;  %v3242_v17 = vld [vmem:[%s4020_s2 + $0x20] sm:$0xff]   ;;  %v3243_v18 = vld [vmem:[%s4020_s2 + $0x30] sm:$0xff]  }
  0x20   :  { %2941 = vmatprep.subr.bf16.mxu1 %v3346_v1  ;;  %v3244_v19 = vld [vmem:[%s4021_s3 + $0x8] sm:$0xff]   ;;  %v3245_v20 = vld [vmem:[%s4021_s3] sm:$0xff]   ;;  %v3246_v21 = vld [vmem:[%s4021_s3 + $0x18] sm:$0xff]  }
  0x21   :  { %2922 = vmatmul.mubr.msk.bf16.vlgmr.msra.gmra.mxu0 %vm110_vm1, %v3445_v10  ;;  %v3247_v22 = vld [vmem:[%s4021_s3 + $0x10] sm:$0xff]   ;;  %v3248_v23 = vld [vmem:[%s4021_s3 + $0x28] sm:$0xff]   ;;  %v3249_v24 = vld [vmem:[%s4021_s3 + $0x20] sm:$0xff]  }
  0x22   :  { %2930 = vmatmul.mubr.msk.bf16.vlgmr.msra.gmra.mxu1 %vm110_vm1, %v3445_v10  ;;  %2934 = vmatpush3.bf16.msra.mxu0 %v3236_v11  ;;  %v3250_v25 = vld [vmem:[%s4021_s3 + $0x38] sm:$0xff]   ;;  %v3251_v26 = vld [vmem:[%s4021_s3 + $0x30] sm:$0xff]  }
  0x23   :  { %2942 = vmatpush3.bf16.msra.mxu1 %v3237_v12  ;;  %2935 = vmatprep.subr.bf16.mxu0 %v3346_v1 }
  0x24   :  { %2943 = vmatprep.subr.bf16.mxu1 %v3346_v1  ;;  %2937 = vmatprep.mubr.msk.bf16.mxu0 %vm3347_vm0, %v3346_v1 }
  0x25   :  { %2945 = vmatprep.mubr.msk.bf16.mxu1 %vm3347_vm0, %v3346_v1 }
  0x26   :  { %2936 = vmatpush3.bf16.msra.mxu0 %v3238_v13 }
  0x27   :  { %2944 = vmatpush3.bf16.msra.mxu1 %v3239_v14  ;;  %2949 = vmatprep.subr.bf16.mxu0 %v3346_v1 }
  0x28   :  { %2957 = vmatprep.subr.bf16.mxu1 %v3346_v1 }
  0x29   :  { %2938 = vmatmul.mubr.msk.bf16.vlgmr.msra.gmra.mxu0 %vm110_vm1, %v3409_v5 }
  0x2a   :  { %2946 = vmatmul.mubr.msk.bf16.vlgmr.msra.gmra.mxu1 %vm110_vm1, %v3409_v5  ;;  %2950 = vmatpush3.bf16.msra.mxu0 %v3240_v15 }
  0x2b   :  { %2958 = vmatpush3.bf16.msra.mxu1 %v3241_v16  ;;  %2951 = vmatprep.subr.bf16.mxu0 %v3346_v1 }
  0x2c   :  { %2959 = vmatprep.subr.bf16.mxu1 %v3346_v1  ;;  %2953 = vmatprep.mubr.msk.bf16.mxu0 %vm3347_vm0, %v3346_v1 }
  0x2d   :  { %2961 = vmatprep.mubr.msk.bf16.mxu1 %vm3347_vm0, %v3346_v1 }
  0x2e   :  { %2952 = vmatpush3.bf16.msra.mxu0 %v3242_v17 }
  0x2f   :  { %2960 = vmatpush3.bf16.msra.mxu1 %v3243_v18  ;;  %2965 = vmatprep.subr.bf16.mxu0 %v3346_v1 }
  0x30   :  { %2973 = vmatprep.subr.bf16.mxu1 %v3346_v1 }
  0x31   :  { %2954 = vmatmul.mubr.msk.bf16.vlgmr.msra.gmra.mxu0 %vm110_vm1, %v3409_v5 }
  0x32   :  { %2962 = vmatmul.mubr.msk.bf16.vlgmr.msra.gmra.mxu1 %vm110_vm1, %v3409_v5  ;;  %2966 = vmatpush3.bf16.msra.mxu0 %v3236_v11 }
  0x33   :  { %2974 = vmatpush3.bf16.msra.mxu1 %v3237_v12  ;;  %2967 = vmatprep.subr.bf16.mxu0 %v3346_v1 }
  0x34   :  { %2975 = vmatprep.subr.bf16.mxu1 %v3346_v1  ;;  %2969 = vmatprep.mubr.msk.bf16.mxu0 %vm3347_vm0, %v3346_v1 }
  0x35   :  { %2977 = vmatprep.mubr.msk.bf16.mxu1 %vm3347_vm0, %v3346_v1 }
  0x36   :  { %2968 = vmatpush3.bf16.msra.mxu0 %v3238_v13 }
  0x37   :  { %2976 = vmatpush3.bf16.msra.mxu1 %v3239_v14  ;;  %2981 = vmatprep.subr.bf16.mxu0 %v3346_v1 }
  0x38   :  { %2989 = vmatprep.subr.bf16.mxu1 %v3346_v1 }
  0x39   :  { %2970 = vmatmul.mubr.msk.bf16.vlgmr.msra.gmra.mxu0 %vm110_vm1, %v3445_v10 }
  0x3a   :  { %2978 = vmatmul.mubr.msk.bf16.vlgmr.msra.gmra.mxu1 %vm110_vm1, %v3445_v10  ;;  %2982 = vmatpush3.bf16.msra.mxu0 %v3240_v15 }
  0x3b   :  { %2990 = vmatpush3.bf16.msra.mxu1 %v3241_v16  ;;  %2983 = vmatprep.subr.bf16.mxu0 %v3346_v1 }
  0x3c   :  { %2991 = vmatprep.subr.bf16.mxu1 %v3346_v1  ;;  %2985 = vmatprep.mubr.msk.bf16.mxu0 %vm3347_vm0, %v3346_v1 }
  0x3d   :  { %2993 = vmatprep.mubr.msk.bf16.mxu1 %vm3347_vm0, %v3346_v1 }
  0x3e   :  { %2984 = vmatpush3.bf16.msra.mxu0 %v3242_v17 }
  0x3f   :  { %2992 = vmatpush3.bf16.msra.mxu1 %v3243_v18  ;;  %2997 = vmatprep.subr.bf16.mxu0 %v3346_v1 }
  0x40   :  { %3005 = vmatprep.subr.bf16.mxu1 %v3346_v1 }
  0x41   :  { %2986 = vmatmul.mubr.msk.bf16.vlgmr.msra.gmra.mxu0 %vm110_vm1, %v3445_v10 }
  0x42   :  { %2994 = vmatmul.mubr.msk.bf16.vlgmr.msra.gmra.mxu1 %vm110_vm1, %v3445_v10  ;;  %3001 = vmatprep.mubr.msk.bf16.mxu0 %vm3347_vm0, %v3346_v1 }
  0x43   :  { %3009 = vmatprep.mubr.msk.bf16.mxu1 %vm3347_vm0, %v3346_v1  ;;  %2998 = vmatpush3.bf16.msra.mxu0 %v3244_v19 }
  0x44   :  { %2999 = vmatprep.subr.bf16.mxu0 %v3346_v1  ;;  %3006 = vmatpush3.bf16.msra.mxu1 %v3246_v21 }
  0x45   :  { %3007 = vmatprep.subr.bf16.mxu1 %v3346_v1 }
  0x47   :  { %3000 = vmatpush3.bf16.msra.mxu0 %v3245_v20 }
  0x48   :  { %3013 = vmatprep.subr.bf16.mxu0 %v3346_v1  ;;  %3008 = vmatpush3.bf16.msra.mxu1 %v3247_v22 }
  0x49   :  { %3021 = vmatprep.subr.bf16.mxu1 %v3346_v1 }
  0x4a   :  { %3002 = vmatmul.mubr.msk.bf16.vlgmr.msra.gmra.mxu0 %vm110_vm1, %v3409_v5 }
  0x4b   :  { %3014 = vmatpush3.bf16.msra.mxu0 %v3248_v23  ;;  %3017 = vmatprep.mubr.msk.bf16.mxu0 %vm3347_vm0, %v3346_v1 }
  0x4c   :  { %3015 = vmatprep.subr.bf16.mxu0 %v3346_v1  ;;  %3010 = vmatmul.mubr.msk.bf16.vlgmr.msra.gmra.mxu1 %vm110_vm1, %v3409_v5 }
  0x4d   :  { %3022 = vmatpush3.bf16.msra.mxu1 %v3250_v25  ;;  %3025 = vmatprep.mubr.msk.bf16.mxu1 %vm3347_vm0, %v3346_v1 }
  0x4e   :  { %3023 = vmatprep.subr.bf16.mxu1 %v3346_v1 }
  0x4f   :  { %3016 = vmatpush3.bf16.msra.mxu0 %v3249_v24 }
  0x50   :  { %3029 = vmatprep.subr.bf16.mxu0 %v3346_v1 }
  0x51   :  { %3024 = vmatpush3.bf16.msra.mxu1 %v3251_v26 }
  0x52   :  { %3018 = vmatmul.mubr.msk.bf16.vlgmr.msra.gmra.mxu0 %vm110_vm1, %v3409_v5  ;;  %3037 = vmatprep.subr.bf16.mxu1 %v3346_v1 }
  0x53   :  { %3030 = vmatpush3.bf16.msra.mxu0 %v3244_v19  ;;  %3033 = vmatprep.mubr.msk.bf16.mxu0 %vm3347_vm0, %v3346_v1 }
  0x54   :  { %3031 = vmatprep.subr.bf16.mxu0 %v3346_v1  ;;  %3026 = vmatmul.mubr.msk.bf16.vlgmr.msra.gmra.mxu1 %vm110_vm1, %v3409_v5 }
  0x55   :  { %3038 = vmatpush3.bf16.msra.mxu1 %v3246_v21  ;;  %3041 = vmatprep.mubr.msk.bf16.mxu1 %vm3347_vm0, %v3346_v1 }
  0x56   :  { %3039 = vmatprep.subr.bf16.mxu1 %v3346_v1 }
  0x57   :  { %3032 = vmatpush3.bf16.msra.mxu0 %v3245_v20 }
  0x58   :  { %3045 = vmatprep.subr.bf16.mxu0 %v3346_v1 }
  0x59   :  { %3040 = vmatpush3.bf16.msra.mxu1 %v3247_v22 }
  0x5a   :  { %3034 = vmatmul.mubr.msk.bf16.vlgmr.msra.gmra.mxu0 %vm110_vm1, %v3445_v10  ;;  %3053 = vmatprep.subr.bf16.mxu1 %v3346_v1 }
  0x5b   :  { %3046 = vmatpush3.bf16.msra.mxu0 %v3248_v23  ;;  %3049 = vmatprep.mubr.msk.bf16.mxu0 %vm3347_vm0, %v3346_v1 }
  0x5c   :  { %3047 = vmatprep.subr.bf16.mxu0 %v3346_v1  ;;  %3042 = vmatmul.mubr.msk.bf16.vlgmr.msra.gmra.mxu1 %vm110_vm1, %v3445_v10 }
  0x5d   :  { %3054 = vmatpush3.bf16.msra.mxu1 %v3250_v25  ;;  %3057 = vmatprep.mubr.msk.bf16.mxu1 %vm3347_vm0, %v3346_v1 }
  0x5e   :  { %3055 = vmatprep.subr.bf16.mxu1 %v3346_v1 }
  0x5f   :  { %3048 = vmatpush3.bf16.msra.mxu0 %v3249_v24 }
  0x60   :  { %3061 = vmatprep.subr.bf16.mxu0 %v3346_v1 }
  0x61   :  { %3056 = vmatpush3.bf16.msra.mxu1 %v3251_v26 }
  0x62   :  { %3050 = vmatmul.mubr.msk.bf16.vlgmr.msra.gmra.mxu0 %vm110_vm1, %v3445_v10  ;;  %3067 = vmatprep.subr.bf16.mxu1 %v3346_v1 }
  0x63   :  { %3063 = vmatprep.mubr.msk.bf16.mxu0 %vm3347_vm0, %v3346_v1 }
  0x64   :  { %3058 = vmatmul.mubr.msk.bf16.vlgmr.msra.gmra.mxu1 %vm110_vm1, %v3445_v10 }
  0x65   :  { %3069 = vmatprep.mubr.msk.bf16.mxu1 %vm3347_vm0, %v3346_v1 }
  0xc9   :  { %v148_v27 = vpop.f32.mrf.mxu0 }
  0xca   :  { %v201_v28 = vpop.f32.mrf.mxu1  ;;  %v1238_v14 = vmul.f32 0.17677669, %v148_v27 }
  0xcb   :  { %v2875_v29 = vpop.f32.mrf.mxu0  ;;  %v1240_v11 = vmul.f32 0.17677669, %v201_v28 }
  0xcc   :  { %v2883_v30 = vpop.f32.mrf.mxu1 }
  0xcd   :  { %v151_v31 = vpop.f32.mrf.mxu0 }
  0xce   :  { %v204_v32 = vpop.f32.mrf.mxu1  ;;  %v1239_v9 = vmul.f32 0.17677669, %v151_v31 }
  0xcf   :  { %v2876_v33 = vpop.f32.mrf.mxu0  ;;  %v1241_v12 = vmul.f32 0.17677669, %v204_v32 }
  0xd0   :  { %v2884_v34 = vpop.f32.mrf.mxu1  ;;  %v1254_v17 = vpack.c.bf16 %v1239_v9, %v1238_v14 }
  0xd1   :  { %v3618_v35 = vpop.f32.mrf.mxu0  ;;  %v1255_v20 = vpack.c.bf16 %v1241_v12, %v1240_v11 }
  0xd2   :  { %v3620_v36 = vpop.f32.mrf.mxu1  ;;  %v1242_v32 = vmul.f32 0.17677669, %v3618_v35 }
  0xd3   :  { %v2891_v37 = vpop.f32.mrf.mxu0  ;;  %v1244_v29 = vmul.f32 0.17677669, %v3620_v36 }
  0xd4   :  { %v2899_v38 = vpop.f32.mrf.mxu1 }
  0xd5   :  { %v257_v39 = vpop.f32.mrf.mxu0 }
  0xd6   :  { %v310_v40 = vpop.f32.mrf.mxu1  ;;  %v1243_v27 = vmul.f32 0.17677669, %v257_v39 }
  0xd7   :  { %v2892_v41 = vpop.f32.mrf.mxu0  ;;  %v1245_v30 = vmul.f32 0.17677669, %v310_v40 }
  0xd8   :  { %v2900_v42 = vpop.f32.mrf.mxu1  ;;  %v1256_v37 = vpack.c.bf16 %v1243_v27, %v1242_v32 }
  0xd9   :  { %v3622_v43 = vpop.f32.mrf.mxu0  ;;  %v1257_v41 = vpack.c.bf16 %v1245_v30, %v1244_v29 }
  0xda   :  { %v3624_v44 = vpop.f32.mrf.mxu1 }
  0xdb   :  { %v2907_v45 = vpop.f32.mrf.mxu0 }
  0xdc   :  { %v2915_v46 = vpop.f32.mrf.mxu1 }
  0xdd   :  { %v3626_v47 = vpop.f32.mrf.mxu0 }
  0xde   :  { %v3628_v48 = vpop.f32.mrf.mxu1 }
  0xdf   :  { %v2908_v49 = vpop.f32.mrf.mxu0 }
  0xe0   :  { %v2916_v50 = vpop.f32.mrf.mxu1  ;;  %v1247_v49 = vmul.f32 0.17677669, %v3626_v47 }
  0xe1   :  { %v3630_v51 = vpop.f32.mrf.mxu0 }
  0xe2   :  { %v3632_v52 = vpop.f32.mrf.mxu1 }
  0xe3   :  { %v2923_v53 = vpop.f32.mrf.mxu0 }
  0xe4   :  { %v2931_v54 = vpop.f32.mrf.mxu1  ;;  %v1248_v53 = vmul.f32 0.17677669, %v3624_v44 }
  0xe5   :  { %v3634_v55 = vpop.f32.mrf.mxu0  ;;  %v1249_v54 = vmul.f32 0.17677669, %v3628_v48 }
  0xe6   :  { %v3636_v56 = vpop.f32.mrf.mxu1 }
  0xe7   :  { %v2924_v57 = vpop.f32.mrf.mxu0 }
  0xe8   :  { %v2932_v58 = vpop.f32.mrf.mxu1 }
  0xe9   :  { %v532_v59 = vpop.f32.mrf.mxu0  ;;  %v1246_v58 = vmul.f32 0.17677669, %v3622_v43  ;;  %v1251_v43 = vmul.f32 0.17677669, %v3634_v55 }
  0xea   :  { %v585_v60 = vpop.f32.mrf.mxu1 }
  0xeb   :  { %v2939_v61 = vpop.f32.mrf.mxu0 }
  0xec   :  { %v2947_v62 = vpop.f32.mrf.mxu1 }
  0xed   :  { %v535_v63 = vpop.f32.mrf.mxu0 }
  0xee   :  { %v1262_v0 = vpack.c.bf16 %v535_v63, %v532_v59  ;;  %v588_v2 = vpop.f32.mrf.mxu1  ;;  %v1259_v63 = vpack.c.bf16 %v1249_v54, %v1248_v53 }
  0xef   :  { %v1263_v3 = vpack.c.bf16 %v588_v2, %v585_v60  ;;  %v2940_v4 = vpop.f32.mrf.mxu0  ;;  %v1258_v60 = vpack.c.bf16 %v1247_v49, %v1246_v58 }
  0xf0   :  { %v1282_v5 = vsel %vm110_vm1, %v1262_v0, 0  ;;  %v2948_v6 = vpop.f32.mrf.mxu1  ;;  %v1252_v4 = vmul.f32 0.17677669, %v3632_v52 }
  0xf1   :  { %v1329_v7 = vsel %vm110_vm1, %v1263_v3, 0  ;;  %v638_v8 = vpop.f32.mrf.mxu0  ;;  %3062 = vmatpush3.bf16.xpose.msra.mxu0 %v1282_v5  ;;  %v1253_v5 = vmul.f32 0.17677669, %v3636_v56  ;;  %v1250_v6 = vmul.f32 0.17677669, %v3630_v51 }
  0xf2   :  { %v691_v10 = vpop.f32.mrf.mxu1  ;;  %3068 = vmatpush3.bf16.xpose.msra.mxu1 %v1329_v7  ;;  %3073 = vmatprep.subr.bf16.mxu0 %v3346_v1 }
  0xf3   :  { %v2955_v13 = vpop.f32.mrf.mxu0  ;;  %3079 = vmatprep.subr.bf16.mxu1 %v3346_v1  ;;  %v1260_v7 = vpack.c.bf16 %v1251_v43, %v1250_v6 }
  0xf4   :  { %v2963_v15 = vpop.f32.mrf.mxu1 }
  0xf5   :  { %v641_v16 = vpop.f32.mrf.mxu0 }
  0xf6   :  { %v1264_v18 = vpack.c.bf16 %v641_v16, %v638_v8  ;;  %v694_v19 = vpop.f32.mrf.mxu1  ;;  %v1261_v8 = vpack.c.bf16 %v1253_v5, %v1252_v4 }
  0xf7   :  { %v1265_v21 = vpack.c.bf16 %v694_v19, %v691_v10  ;;  %v2956_v22 = vpop.f32.mrf.mxu0 }
  0xf8   :  { %v1376_v23 = vsel %vm110_vm1, %v1264_v18, 0  ;;  %v2964_v24 = vpop.f32.mrf.mxu1  ;;  %3064 = vmatmul.mubr.msk.bf16.vlgmr.msra.gmra.mxu0 %vm110_vm1, %v1254_v17 }
  0xf9   :  { %v1423_v25 = vsel %vm110_vm1, %v1265_v21, 0  ;;  %3070 = vmatmul.mubr.msk.bf16.vlgmr.msra.gmra.mxu1 %vm110_vm1, %v1255_v20  ;;  %v732_v26 = vpop.f32.mrf.mxu0  ;;  %3074 = vmatpush3.bf16.xpose.msra.mxu0 %v1376_v23 }
  0xfa   :  { %v773_v28 = vpop.f32.mrf.mxu1  ;;  %3080 = vmatpush3.bf16.xpose.msra.mxu1 %v1423_v25  ;;  %3075 = vmatprep.mubr.msk.bf16.mxu0 %vm3347_vm0, %v3346_v1 }
  0xfb   :  { %v2971_v31 = vpop.f32.mrf.mxu0  ;;  %3081 = vmatprep.mubr.msk.bf16.mxu1 %vm3347_vm0, %v3346_v1  ;;  %3085 = vmatprep.subr.bf16.mxu0 %v3346_v1 }
  0xfc   :  { %v2979_v33 = vpop.f32.mrf.mxu1  ;;  %3091 = vmatprep.subr.bf16.mxu1 %v3346_v1 }
  0xfd   :  { %v735_v34 = vpop.f32.mrf.mxu0 }
  0xfe   :  { %v1266_v38 = vpack.c.bf16 %v735_v34, %v732_v26  ;;  %v776_v39 = vpop.f32.mrf.mxu1 }
  0xff   :  { %v1267_v42 = vpack.c.bf16 %v776_v39, %v773_v28  ;;  %v2972_v45 = vpop.f32.mrf.mxu0 }
 0x100   :  { %v1470_v36 = vsel %vm110_vm1, %v1266_v38, 0  ;;  %v2980_v40 = vpop.f32.mrf.mxu1  ;;  %3076 = vmatmul.mubr.msk.bf16.vlgmr.msra.gmra.mxu0 %vm110_vm1, %v1256_v37 }
 0x101   :  { %v1517_v46 = vsel %vm110_vm1, %v1267_v42, 0  ;;  %3082 = vmatmul.mubr.msk.bf16.vlgmr.msra.gmra.mxu1 %vm110_vm1, %v1257_v41  ;;  %v814_v35 = vpop.f32.mrf.mxu0  ;;  %3086 = vmatpush3.bf16.xpose.msra.mxu0 %v1470_v36 }
 0x102   :  { %v855_v50 = vpop.f32.mrf.mxu1  ;;  %3092 = vmatpush3.bf16.xpose.msra.mxu1 %v1517_v46  ;;  %3087 = vmatprep.mubr.msk.bf16.mxu0 %vm3347_vm0, %v3346_v1 }
 0x103   :  { %v2987_v57 = vpop.f32.mrf.mxu0  ;;  %3093 = vmatprep.mubr.msk.bf16.mxu1 %vm3347_vm0, %v3346_v1  ;;  %3097 = vmatprep.subr.bf16.mxu0 %v3346_v1 }
 0x104   :  { %v2995_v59 = vpop.f32.mrf.mxu1  ;;  %3103 = vmatprep.subr.bf16.mxu1 %v3346_v1 }
 0x105   :  { %v817_v47 = vpop.f32.mrf.mxu0 }
 0x106   :  { %v1268_v61 = vpack.c.bf16 %v817_v47, %v814_v35  ;;  %v858_v62 = vpop.f32.mrf.mxu1 }
 0x107   :  { %v1269_v0 = vpack.c.bf16 %v858_v62, %v855_v50  ;;  %v2988_v44 = vpop.f32.mrf.mxu0 }
 0x108   :  { %v1564_v48 = vsel %vm110_vm1, %v1268_v61, 0  ;;  %v2996_v2 = vpop.f32.mrf.mxu1  ;;  %3088 = vmatmul.mubr.msk.bf16.vlgmr.msra.gmra.mxu0 %vm110_vm1, %v1258_v60 }
 0x109   :  { %v1611_v3 = vsel %vm110_vm1, %v1269_v0, 0  ;;  %3094 = vmatmul.mubr.msk.bf16.vlgmr.msra.gmra.mxu1 %vm110_vm1, %v1259_v63  ;;  %3098 = vmatpush3.bf16.xpose.msra.mxu0 %v1564_v48 }
 0x10a   :  { %3104 = vmatpush3.bf16.xpose.msra.mxu1 %v1611_v3  ;;  %3099 = vmatprep.mubr.msk.bf16.mxu0 %vm3347_vm0, %v3346_v1  ;;  %v908_v52 = vpop.f32.mrf.mxu0 }
 0x10b   :  { %3105 = vmatprep.mubr.msk.bf16.mxu1 %vm3347_vm0, %v3346_v1  ;;  %3109 = vmatprep.subr.bf16.mxu0 %v3346_v1 }
 0x10c   :  { %3115 = vmatprep.subr.bf16.mxu1 %v3346_v1  ;;  %v3003_v55 = vpop.f32.mrf.mxu0  ;;  %v961_v9 = vpop.f32.mrf.mxu1 }
 0x10e   :  { %v911_v56 = vpop.f32.mrf.mxu0  ;;  %v3011_v11 = vpop.f32.mrf.mxu1 }
 0x10f   :  { %v1270_v10 = vpack.c.bf16 %v911_v56, %v908_v52 }
 0x110   :  { %3100 = vmatmul.mubr.msk.bf16.vlgmr.msra.gmra.mxu0 %vm110_vm1, %v1260_v7  ;;  %v3004_v51 = vpop.f32.mrf.mxu0  ;;  %v964_v12 = vpop.f32.mrf.mxu1 }
 0x111   :  { %3106 = vmatmul.mubr.msk.bf16.vlgmr.msra.gmra.mxu1 %vm110_vm1, %v1261_v8  ;;  %3111 = vmatprep.mubr.msk.bf16.mxu0 %vm3347_vm0, %v3346_v1  ;;  %v1271_v14 = vpack.c.bf16 %v964_v12, %v961_v9 }
 0x112   :  { %3117 = vmatprep.mubr.msk.bf16.mxu1 %vm3347_vm0, %v3346_v1  ;;  %3110 = vmatpush3.bf16.msra.mxu0 %v1270_v10  ;;  %v3688_v13 = vpop.f32.mrf.mxu0  ;;  %v3012_v15 = vpop.f32.mrf.mxu1 }
 0x113   :  { %3121 = vmatprep.subr.bf16.mxu0 %v3346_v1  ;;  %3116 = vmatpush3.bf16.msra.mxu1 %v1271_v14 }
 0x114   :  { %v3019_v16 = vpop.f32.mrf.mxu0  ;;  %v3693_v18 = vpop.f32.mrf.mxu1  ;;  %3127 = vmatprep.subr.bf16.mxu1 %v3346_v1 }
 0x116   :  { %v3691_v17 = vpop.f32.mrf.mxu0  ;;  %v3027_v21 = vpop.f32.mrf.mxu1 }
 0x117   :  { %v1272_v19 = vpack.c.bf16 %v3691_v17, %v3688_v13 }
 0x118   :  { %v3020_v20 = vpop.f32.mrf.mxu0  ;;  %v3698_v22 = vpop.f32.mrf.mxu1 }
 0x119   :  { %v1273_v24 = vpack.c.bf16 %v3698_v22, %v3693_v18 }
 0x11a   :  { %v3700_v23 = vpop.f32.mrf.mxu0  ;;  %v3028_v25 = vpop.f32.mrf.mxu1 }
 0x11c   :  { %v3035_v26 = vpop.f32.mrf.mxu0  ;;  %v3706_v28 = vpop.f32.mrf.mxu1 }
 0x11e   :  { %v3704_v27 = vpop.f32.mrf.mxu0  ;;  %v3043_v31 = vpop.f32.mrf.mxu1 }
 0x11f   :  { %v1274_v29 = vpack.c.bf16 %v3704_v27, %v3700_v23 }
 0x120   :  { %v3036_v30 = vpop.f32.mrf.mxu0  ;;  %v3710_v32 = vpop.f32.mrf.mxu1 }
 0x121   :  { %v1275_v34 = vpack.c.bf16 %v3710_v32, %v3706_v28 }
 0x122   :  { %v3712_v33 = vpop.f32.mrf.mxu0  ;;  %v3044_v37 = vpop.f32.mrf.mxu1 }
 0x124   :  { %v3051_v38 = vpop.f32.mrf.mxu0  ;;  %v3718_v41 = vpop.f32.mrf.mxu1 }
 0x126   :  { %v3716_v39 = vpop.f32.mrf.mxu0  ;;  %v3059_v36 = vpop.f32.mrf.mxu1 }
 0x127   :  { %v1276_v42 = vpack.c.bf16 %v3716_v39, %v3712_v33 }
 0x128   :  { %v3052_v45 = vpop.f32.mrf.mxu0  ;;  %v3722_v40 = vpop.f32.mrf.mxu1 }
 0x129   :  { %v1277_v46 = vpack.c.bf16 %v3722_v40, %v3718_v41  ;;  %v3252_v41 = vld [vmem:[%s4022_s4 + $0x8] sm:$0xff]   ;;  %v3253_v40 = vld [vmem:[%s4022_s4] sm:$0xff]  }
 0x12a   :  { %v3060_v35 = vpop.f32.mrf.mxu1 }
 0x1b8   :  { %v3726_v49 = vpop.f32.mrf.mxu0 }
 0x1b9   :  { %v3728_v50 = vpop.f32.mrf.mxu1  ;;  %v1655_v53 = vsel %vm1654_vm2, %v3726_v49, -inf }
 0x1ba   :  { %v1661_v54 = vsel %vm1654_vm2, %v3728_v50, -inf  ;;  %1656 = vmax.xlane.f32.xlu0 %v1655_v53  ;;  %v3065_v57 = vpop.f32.mrf.mxu0 }
 0x1bb   :  { %1662 = vmax.xlane.f32.xlu1 %v1661_v54  ;;  %v3071_v58 = vpop.f32.mrf.mxu1 }
 0x1bc   :  { %v3734_v59 = vpop.f32.mrf.mxu0 }
 0x1bd   :  { %v3736_v47 = vpop.f32.mrf.mxu1  ;;  %v1658_v60 = vsel %vm1654_vm2, %v3734_v59, -inf }
 0x1be   :  { %v1664_v61 = vsel %vm1654_vm2, %v3736_v47, -inf  ;;  %1659 = vmax.xlane.f32.xlu0 %v1658_v60  ;;  %v3066_v62 = vpop.f32.mrf.mxu0 }
 0x1bf   :  { %1665 = vmax.xlane.f32.xlu1 %v1664_v61  ;;  %v3072_v63 = vpop.f32.mrf.mxu1 }
 0x1c0   :  { %v3742_v0 = vpop.f32.mrf.mxu0 }
 0x1c1   :  { %v3744_v44 = vpop.f32.mrf.mxu1  ;;  %v1667_v48 = vsel %vm1654_vm2, %v3742_v0, -inf }
 0x1c2   :  { %1668 = vmax.xlane.f32.xlu0 %v1667_v48  ;;  %v3077_v2 = vpop.f32.mrf.mxu0  ;;  %v1673_v5 = vsel %vm1654_vm2, %v3744_v44, -inf }
 0x1c3   :  { %v3083_v3 = vpop.f32.mrf.mxu1 }
 0x1c4   :  { %v3748_v43 = vpop.f32.mrf.mxu0 }
 0x1c5   :  { %v3750_v4 = vpop.f32.mrf.mxu1  ;;  %v1670_v6 = vsel %vm1654_vm2, %v3748_v43, -inf }
 0x1c6   :  { %1674 = vmax.xlane.f32.xlu0 %v1673_v5  ;;  %1671 = vmax.xlane.f32.xlu1 %v1670_v6  ;;  %v3078_v7 = vpop.f32.mrf.mxu0  ;;  %v1676_v56 = vsel %vm1654_vm2, %v3750_v4, -inf }
 0x1c7   :  { %v3084_v8 = vpop.f32.mrf.mxu1 }
 0x1c8   :  { %v3756_v52 = vpop.f32.mrf.mxu0 }
 0x1c9   :  { %v3758_v55 = vpop.f32.mrf.mxu1  ;;  %v1679_v9 = vsel %vm1654_vm2, %v3756_v52, -inf }
 0x1ca   :  { %1677 = vmax.xlane.f32.xlu1 %v1676_v56  ;;  %1680 = vmax.xlane.f32.xlu0 %v1679_v9  ;;  %v3089_v10 = vpop.f32.mrf.mxu0  ;;  %v1685_v14 = vsel %vm1654_vm2, %v3758_v55, -inf }
 0x1cb   :  { %v3095_v51 = vpop.f32.mrf.mxu1 }
 0x1cc   :  { %v3764_v11 = vpop.f32.mrf.mxu0 }
 0x1cd   :  { %v3766_v12 = vpop.f32.mrf.mxu1  ;;  %v1682_v15 = vsel %vm1654_vm2, %v3764_v11, -inf }
 0x1ce   :  { %1686 = vmax.xlane.f32.xlu0 %v1685_v14  ;;  %1683 = vmax.xlane.f32.xlu1 %v1682_v15  ;;  %v3090_v16 = vpop.f32.mrf.mxu0  ;;  %v1688_v26 = vsel %vm1654_vm2, %v3766_v12, -inf }
 0x1cf   :  { %v3096_v20 = vpop.f32.mrf.mxu1 }
 0x1d0   :  { %v3772_v21 = vpop.f32.mrf.mxu0 }
 0x1d1   :  { %v3774_v25 = vpop.f32.mrf.mxu1  ;;  %v1691_v30 = vsel %vm1654_vm2, %v3772_v21, -inf }
 0x1d2   :  { %1689 = vmax.xlane.f32.xlu1 %v1688_v26  ;;  %1692 = vmax.xlane.f32.xlu0 %v1691_v30  ;;  %v3101_v31 = vpop.f32.mrf.mxu0  ;;  %v1697_v36 = vsel %vm1654_vm2, %v3774_v25, -inf }
 0x1d3   :  { %v3107_v37 = vpop.f32.mrf.mxu1 }
 0x1d4   :  { %v3780_v38 = vpop.f32.mrf.mxu0 }
 0x1d5   :  { %v3782_v45 = vpop.f32.mrf.mxu1  ;;  %v1694_v35 = vsel %vm1654_vm2, %v3780_v38, -inf }
 0x1d6   :  { %1698 = vmax.xlane.f32.xlu0 %v1697_v36  ;;  %1695 = vmax.xlane.f32.xlu1 %v1694_v35  ;;  %v3102_v53 = vpop.f32.mrf.mxu0  ;;  %v1700_v57 = vsel %vm1654_vm2, %v3782_v45, -inf }
 0x1d7   :  { %v3108_v54 = vpop.f32.mrf.mxu1 }
 0x1da   :  { %1701 = vmax.xlane.f32.xlu1 %v1700_v57 }
 0x243   :  { %v1657_v58 = vpop.xlane.xlu0 %1656 }
 0x244   :  { %v1663_v60 = vpop.xlane.xlu1 %1662  ;;  %v1703_v61 = vsub.f32 %v3726_v49, %v1657_v58 }
 0x245   :  { %v1705_v62 = vsub.f32 %v3728_v50, %v1663_v60 }
 0x246   :  { %v1719_v63 = vmul.f32 1.442695, %v1703_v61 }
 0x247   :  { %v1723_v48 = vmul.f32 1.442695, %v1705_v62  ;;  %v1660_v2 = vpop.xlane.xlu0 %1659 }
 0x248   :  { %3260 = vpow2.f32 %v1719_v63  ;;  %v1666_v3 = vpop.xlane.xlu1 %1665  ;;  %v1704_v5 = vsub.f32 %v3734_v59, %v1660_v2 }
 0x249   :  { %v1706_v6 = vsub.f32 %v3736_v47, %v1666_v3  ;;  %3262 = vpow2.f32 %v1723_v48 }
 0x24a   :  { %v1721_v7 = vmul.f32 1.442695, %v1704_v5 }
 0x24b   :  { %v1725_v8 = vmul.f32 1.442695, %v1706_v6  ;;  %v1669_v56 = vpop.xlane.xlu0 %1668 }
 0x24c   :  { %3264 = vpow2.f32 %v1721_v7  ;;  %v1707_v9 = vsub.f32 %v3742_v0, %v1669_v56 }
 0x24d   :  { %3266 = vpow2.f32 %v1725_v8 }
 0x24e   :  { %v1727_v49 = vmul.f32 1.442695, %v1707_v9 }
 0x24f   :  { %v1675_v10 = vpop.xlane.xlu0 %1674  ;;  %v1672_v50 = vpop.xlane.xlu1 %1671 }
 0x250   :  { %3268 = vpow2.f32 %v1727_v49  ;;  %v1709_v51 = vsub.f32 %v3744_v44, %v1675_v10  ;;  %v1708_v14 = vsub.f32 %v3748_v43, %v1672_v50 }
 0x252   :  { %v1731_v15 = vmul.f32 1.442695, %v1709_v51  ;;  %v1729_v59 = vmul.f32 1.442695, %v1708_v14 }
 0x253   :  { %v1678_v16 = vpop.xlane.xlu1 %1677  ;;  %v1681_v47 = vpop.xlane.xlu0 %1680 }
 0x254   :  { %3270 = vpow2.f32 %v1731_v15  ;;  %v1710_v20 = vsub.f32 %v3750_v4, %v1678_v16  ;;  %v1711_v26 = vsub.f32 %v3756_v52, %v1681_v47 }
 0x255   :  { %v3799_v30 = vpop.eup %3260  ;;  %3272 = vpow2.f32 %v1729_v59 }
 0x256   :  { %v1733_v0 = vmul.f32 1.442695, %v1710_v20  ;;  %v1735_v31 = vmul.f32 1.442695, %v1711_v26  ;;  %v1751_v37 = vsel %vm1654_vm2, %v3799_v30, 0.0  ;;  %v3803_v44 = vpop.eup %3262 }
 0x257   :  { %v1687_v43 = vpop.xlane.xlu0 %1686  ;;  %v1684_v36 = vpop.xlane.xlu1 %1683  ;;  %1752 = vadd.xlane.f32.xlu0 %v1751_v37  ;;  %v1757_v57 = vsel %vm1654_vm2, %v3803_v44, 0.0 }
 0x258   :  { %3274 = vpow2.f32 %v1733_v0  ;;  %v1713_v35 = vsub.f32 %v3758_v55, %v1687_v43  ;;  %v1712_v4 = vsub.f32 %v3764_v11, %v1684_v36 }
 0x259   :  { %v3807_v53 = vpop.eup %3264  ;;  %3276 = vpow2.f32 %v1735_v31 }
 0x25a   :  { %v1739_v52 = vmul.f32 1.442695, %v1713_v35  ;;  %v1737_v54 = vmul.f32 1.442695, %v1712_v4  ;;  %v1754_v58 = vsel %vm1654_vm2, %v3807_v53, 0.0  ;;  %v3813_v60 = vpop.eup %3266 }
 0x25b   :  { %v1690_v61 = vpop.xlane.xlu1 %1689  ;;  %1758 = vadd.xlane.f32.xlu0 %v1757_v57  ;;  %v1693_v62 = vpop.xlane.xlu0 %1692  ;;  %1755 = vadd.xlane.f32.xlu1 %v1754_v58  ;;  %v1760_v5 = vsel %vm1654_vm2, %v3813_v60, 0.0 }
 0x25c   :  { %3278 = vpow2.f32 %v1739_v52  ;;  %v1714_v55 = vsub.f32 %v3766_v12, %v1690_v61  ;;  %v1715_v11 = vsub.f32 %v3772_v21, %v1693_v62 }
 0x25d   :  { %v3817_v63 = vpop.eup %3268  ;;  %3280 = vpow2.f32 %v1737_v54 }
 0x25e   :  { %v1741_v48 = vmul.f32 1.442695, %v1714_v55  ;;  %v1743_v2 = vmul.f32 1.442695, %v1715_v11  ;;  %v1763_v3 = vsel %vm1654_vm2, %v3817_v63, 0.0 }
 0x25f   :  { %1764 = vadd.xlane.f32.xlu0 %v1763_v3  ;;  %v1699_v6 = vpop.xlane.xlu0 %1698  ;;  %1761 = vadd.xlane.f32.xlu1 %v1760_v5  ;;  %v1696_v7 = vpop.xlane.xlu1 %1695 }
 0x260   :  { %3282 = vpow2.f32 %v1741_v48  ;;  %v1717_v12 = vsub.f32 %v3774_v25, %v1699_v6  ;;  %v1716_v21 = vsub.f32 %v3780_v38, %v1696_v7 }
 0x261   :  { %v3825_v8 = vpop.eup %3270  ;;  %3284 = vpow2.f32 %v1743_v2 }
 0x262   :  { %v3827_v56 = vpop.eup %3272  ;;  %v1747_v9 = vmul.f32 1.442695, %v1717_v12  ;;  %v1745_v49 = vmul.f32 1.442695, %v1716_v21  ;;  %v1769_v10 = vsel %vm1654_vm2, %v3825_v8, 0.0 }
 0x263   :  { %1770 = vadd.xlane.f32.xlu0 %v1769_v10  ;;  %v1766_v50 = vsel %vm1654_vm2, %v3827_v56, 0.0  ;;  %v1702_v51 = vpop.xlane.xlu1 %1701 }
 0x264   :  { %3286 = vpow2.f32 %v1747_v9  ;;  %1767 = vadd.xlane.f32.xlu1 %v1766_v50  ;;  %v1718_v25 = vsub.f32 %v3782_v45, %v1702_v51 }
 0x265   :  { %v3834_v38 = vpop.eup %3274  ;;  %3288 = vpow2.f32 %v1745_v49 }
 0x266   :  { %v3836_v14 = vpop.eup %3276  ;;  %v1749_v15 = vmul.f32 1.442695, %v1718_v25  ;;  %v1772_v59 = vsel %vm1654_vm2, %v3834_v38, 0.0 }
 0x267   :  { %v1775_v16 = vsel %vm1654_vm2, %v3836_v14, 0.0 }
 0x268   :  { %3290 = vpow2.f32 %v1749_v15  ;;  %1776 = vadd.xlane.f32.xlu0 %v1775_v16  ;;  %1773 = vadd.xlane.f32.xlu1 %v1772_v59 }
 0x269   :  { %v3842_v47 = vpop.eup %3278 }
 0x26a   :  { %v3844_v20 = vpop.eup %3280  ;;  %v1781_v45 = vsel %vm1654_vm2, %v3842_v47, 0.0 }
 0x26b   :  { %v1778_v26 = vsel %vm1654_vm2, %v3844_v20, 0.0 }
 0x26c   :  { %1782 = vadd.xlane.f32.xlu0 %v1781_v45  ;;  %1779 = vadd.xlane.f32.xlu1 %v1778_v26 }
 0x26d   :  { %v3850_v0 = vpop.eup %3282 }
 0x26e   :  { %v3852_v31 = vpop.eup %3284  ;;  %v1784_v37 = vsel %vm1654_vm2, %v3850_v0, 0.0 }
 0x26f   :  { %v1787_v43 = vsel %vm1654_vm2, %v3852_v31, 0.0 }
 0x270   :  { %1788 = vadd.xlane.f32.xlu0 %v1787_v43  ;;  %1785 = vadd.xlane.f32.xlu1 %v1784_v37 }
 0x271   :  { %v3858_v36 = vpop.eup %3286 }
 0x272   :  { %v3860_v35 = vpop.eup %3288  ;;  %v1793_v4 = vsel %vm1654_vm2, %v3858_v36, 0.0 }
 0x273   :  { %v1790_v52 = vsel %vm1654_vm2, %v3860_v35, 0.0 }
 0x274   :  { %1794 = vadd.xlane.f32.xlu0 %v1793_v4  ;;  %1791 = vadd.xlane.f32.xlu1 %v1790_v52 }
 0x275   :  { %v3866_v54 = vpop.eup %3290 }
 0x276   :  { %v1796_v57 = vsel %vm1654_vm2, %v3866_v54, 0.0 }
 0x278   :  { %1797 = vadd.xlane.f32.xlu1 %v1796_v57 }
 0x2e0   :  { %v1753_v58 = vpop.xlane.xlu0 %1752 }
 0x2e1   :  { %3292 = vrcp.f32 %v1753_v58 }
 0x2e4   :  { %v1759_v61 = vpop.xlane.xlu0 %1758  ;;  %v1756_v62 = vpop.xlane.xlu1 %1755 }
 0x2e5   :  { %3294 = vrcp.f32 %v1756_v62 }
 0x2e6   :  { %3296 = vrcp.f32 %v1759_v61  ;;  %v3256_v61 = vld [vmem:[%s4022_s4 + $0x28] sm:$0xff]  }
 0x2e8   :  { %v1765_v55 = vpop.xlane.xlu0 %1764  ;;  %v1762_v11 = vpop.xlane.xlu1 %1761 }
 0x2e9   :  { %3298 = vrcp.f32 %v1762_v11 }
 0x2ea   :  { %3300 = vrcp.f32 %v1765_v55 }
 0x2ec   :  { %v1771_v48 = vpop.xlane.xlu0 %1770 }
 0x2ed   :  { %v1768_v2 = vpop.xlane.xlu1 %1767 }
 0x2ee   :  { %3302 = vrcp.f32 %v1768_v2  ;;  %v3293_v3 = vpop.eup %3292 }
 0x2ef   :  { %3304 = vrcp.f32 %v1771_v48  ;;  %v1815_v12 = vmul.f32 %v3293_v3, %v3799_v30  ;;  %v3257_v3 = vld [vmem:[%s4022_s4 + $0x20] sm:$0xff]  }
 0x2f1   :  { %v1777_v5 = vpop.xlane.xlu0 %1776  ;;  %v1774_v6 = vpop.xlane.xlu1 %1773 }
 0x2f2   :  { %v3295_v7 = vpop.eup %3294  ;;  %3306 = vrcp.f32 %v1774_v6 }
 0x2f3   :  { %v1816_v21 = vmul.f32 %v3295_v7, %v3807_v53  ;;  %v3297_v9 = vpop.eup %3296  ;;  %3308 = vrcp.f32 %v1777_v5  ;;  %v3258_v5 = vld [vmem:[%s4022_s4 + $0x38] sm:$0xff]  }
 0x2f4   :  { %v1817_v25 = vmul.f32 %v3297_v9, %v3803_v44  ;;  %v3259_v9 = vld [vmem:[%s4022_s4 + $0x30] sm:$0xff]  }
 0x2f5   :  { %v1783_v49 = vpop.xlane.xlu0 %1782  ;;  %v1780_v10 = vpop.xlane.xlu1 %1779  ;;  %v1831_v50 = vpack.c.bf16 %v1816_v21, %v1815_v12 }
 0x2f6   :  { %v3299_v51 = vpop.eup %3298  ;;  %3310 = vrcp.f32 %v1780_v10 }
 0x2f7   :  { %3112 = vmatmul.mubr.msk.bf16.vlgmr.msra.gmra.mxu0 %vm1654_vm2, %v1831_v50  ;;  %v1818_v15 = vmul.f32 %v3299_v51, %v3813_v60  ;;  %v3301_v59 = vpop.eup %3300  ;;  %3312 = vrcp.f32 %v1783_v49 }
 0x2f8   :  { %3122 = vmatpush3.bf16.msra.mxu0 %v1272_v19  ;;  %3123 = vmatprep.mubr.msk.bf16.mxu0 %vm3347_vm0, %v3346_v1  ;;  %v1819_v44 = vmul.f32 %v3301_v59, %v3817_v63 }
 0x2f9   :  { %v1789_v30 = vpop.xlane.xlu0 %1788  ;;  %v1786_v53 = vpop.xlane.xlu1 %1785  ;;  %v1832_v16 = vpack.c.bf16 %v1818_v15, %v1817_v25  ;;  %3133 = vmatprep.subr.bf16.mxu0 %v3346_v1 }
 0x2fa   :  { %3314 = vrcp.f32 %v1786_v53 }
 0x2fb   :  { %v3303_v45 = vpop.eup %3302  ;;  %3118 = vmatmul.mubr.msk.bf16.vlgmr.msra.gmra.mxu1 %vm1654_vm2, %v1832_v16  ;;  %3316 = vrcp.f32 %v1789_v30 }
 0x2fc   :  { %v1820_v60 = vmul.f32 %v3303_v45, %v3827_v56  ;;  %3128 = vmatpush3.bf16.msra.mxu1 %v1273_v24  ;;  %3129 = vmatprep.mubr.msk.bf16.mxu1 %vm3347_vm0, %v3346_v1  ;;  %v3305_v19 = vpop.eup %3304 }
 0x2fd   :  { %v1795_v13 = vpop.xlane.xlu0 %1794  ;;  %v1792_v17 = vpop.xlane.xlu1 %1791  ;;  %3139 = vmatprep.subr.bf16.mxu1 %v3346_v1  ;;  %v1821_v22 = vmul.f32 %v3305_v19, %v3825_v8 }
 0x2fe   :  { %v1833_v26 = vpack.c.bf16 %v1820_v60, %v1819_v44  ;;  %3318 = vrcp.f32 %v1792_v17 }
 0x2ff   :  { %v3307_v37 = vpop.eup %3306  ;;  %3320 = vrcp.f32 %v1795_v13 }
 0x300   :  { %3124 = vmatmul.mubr.msk.bf16.vlgmr.msra.gmra.mxu0 %vm1654_vm2, %v1833_v26  ;;  %v1822_v24 = vmul.f32 %v3307_v37, %v3834_v38  ;;  %v3309_v63 = vpop.eup %3308 }
 0x301   :  { %3134 = vmatpush3.bf16.msra.mxu0 %v1274_v29  ;;  %v1798_v18 = vpop.xlane.xlu1 %1797  ;;  %3135 = vmatprep.mubr.msk.bf16.mxu0 %vm3347_vm0, %v3346_v1  ;;  %v1823_v4 = vmul.f32 %v3309_v63, %v3836_v14 }
 0x302   :  { %3322 = vrcp.f32 %v1798_v18  ;;  %3145 = vmatprep.subr.bf16.mxu0 %v3346_v1  ;;  %v1834_v56 = vpack.c.bf16 %v1822_v24, %v1821_v22 }
 0x303   :  { %v3311_v43 = vpop.eup %3310 }
 0x304   :  { %3130 = vmatmul.mubr.msk.bf16.vlgmr.msra.gmra.mxu1 %vm1654_vm2, %v1834_v56  ;;  %v1824_v23 = vmul.f32 %v3311_v43, %v3844_v20  ;;  %v3313_v27 = vpop.eup %3312 }
 0x305   :  { %3140 = vmatpush3.bf16.msra.mxu1 %v1275_v34  ;;  %3141 = vmatprep.mubr.msk.bf16.mxu1 %vm3347_vm0, %v3346_v1  ;;  %v1825_v38 = vmul.f32 %v3313_v27, %v3842_v47 }
 0x306   :  { %v1835_v29 = vpack.c.bf16 %v1824_v23, %v1823_v4  ;;  %3151 = vmatprep.subr.bf16.mxu1 %v3346_v1 }
 0x307   :  { %v3315_v8 = vpop.eup %3314 }
 0x308   :  { %3136 = vmatmul.mubr.msk.bf16.vlgmr.msra.gmra.mxu0 %vm1654_vm2, %v1835_v29  ;;  %v1826_v14 = vmul.f32 %v3315_v8, %v3850_v0  ;;  %v3317_v52 = vpop.eup %3316 }
 0x309   :  { %3146 = vmatpush3.bf16.msra.mxu0 %v1276_v42  ;;  %3147 = vmatprep.mubr.msk.bf16.mxu0 %vm3347_vm0, %v3346_v1  ;;  %v1827_v20 = vmul.f32 %v3317_v52, %v3852_v31 }
 0x30a   :  { %v1836_v28 = vpack.c.bf16 %v1826_v14, %v1825_v38  ;;  %3157 = vmatprep.subr.bf16.mxu0 %v3346_v1 }
 0x30b   :  { %v3319_v32 = vpop.eup %3318 }
 0x30c   :  { %v3321_v34 = vpop.eup %3320  ;;  %3142 = vmatmul.mubr.msk.bf16.vlgmr.msra.gmra.mxu1 %vm1654_vm2, %v1836_v28  ;;  %v1828_v47 = vmul.f32 %v3319_v32, %v3860_v35 }
 0x30d   :  { %3152 = vmatpush3.bf16.msra.mxu1 %v1277_v46  ;;  %3153 = vmatprep.mubr.msk.bf16.mxu1 %vm3347_vm0, %v3346_v1  ;;  %v1829_v42 = vmul.f32 %v3321_v34, %v3858_v36  ;;  %v3254_v46 = vld [vmem:[%s4022_s4 + $0x18] sm:$0xff]   ;;  %v3255_v36 = vld [vmem:[%s4022_s4 + $0x10] sm:$0xff]  }
 0x30e   :  { %v1837_v39 = vpack.c.bf16 %v1828_v47, %v1827_v20  ;;  %3165 = vmatprep.subr.bf16.mxu1 %v3346_v1 }
 0x30f   :  { %v3323_v33 = vpop.eup %3322 }
 0x310   :  { %v1830_v0 = vmul.f32 %v3323_v33, %v3866_v54  ;;  %3148 = vmatmul.mubr.msk.bf16.vlgmr.msra.gmra.mxu0 %vm1654_vm2, %v1837_v39 }
 0x311   :  { %3161 = vmatprep.mubr.msk.bf16.mxu0 %vm3347_vm0, %v3346_v1  ;;  %3158 = vmatpush3.bf16.msra.mxu0 %v3252_v41 }
 0x312   :  { %v1838_v31 = vpack.c.bf16 %v1830_v0, %v1829_v42  ;;  %3159 = vmatprep.subr.bf16.mxu0 %v3346_v1 }
 0x314   :  { %3154 = vmatmul.mubr.msk.bf16.vlgmr.msra.gmra.mxu1 %vm1654_vm2, %v1838_v31 }
 0x315   :  { %3169 = vmatprep.mubr.msk.bf16.mxu1 %vm3347_vm0, %v3346_v1  ;;  %3160 = vmatpush3.bf16.msra.mxu0 %v3253_v40 }
 0x316   :  { %3166 = vmatpush3.bf16.msra.mxu1 %v3254_v46  ;;  %3173 = vmatprep.subr.bf16.mxu0 %v3346_v1 }
 0x317   :  { %3167 = vmatprep.subr.bf16.mxu1 %v3346_v1 }
 0x31a   :  { %3168 = vmatpush3.bf16.msra.mxu1 %v3255_v36 }
 0x31b   :  { %3181 = vmatprep.subr.bf16.mxu1 %v3346_v1 }
 0x3b7   :  { %v1876_v35 = vpop.f32.mrf.mxu0 }
 0x3b9   :  { %v3113_v54 = vpop.f32.mrf.mxu0 }
 0x3ba   :  { %v2740_v54 = vld [vmem:[%s4023_s5] ss:$0 sm:$0xff]  ;;  %s3348_s5 = smov [#allocation2]  }
 0x3bb   :  { %v1879_v57 = vpop.f32.mrf.mxu0  ;;  %v1920_v58 = vpop.f32.mrf.mxu1  ;;  %s2647_s11 = sshll.u32 %s3348_s5, 4  ;;  %s2648_s11 = int_to_ptr.vmem [resolvable:$true] %s2647_s11 }
 0x3bc   :  { %v2191_v62 = vpack.c.bf16 %v1879_v57, %v1876_v35  ;;  %s3324_s12 = scalar_lea.vmem %s2648_s11, 512  ;;  %p3329_p1 = scmp.lt.s32.totalorder %s2648_s11, %s2648_s11 }
 0x3bd   :  { %v3114_v55 = vpop.f32.mrf.mxu0  ;;  %v3119_v11 = vpop.f32.mrf.mxu1  ;;  %p3325_p0 = scmp.ne.s32.totalorder %s2648_s11, %s3324_s12  ;;  %p3330_p2 = scmp.lt.s32.totalorder %s3324_s12, %s3324_s12 }
 0x3be   :  { %3162 = vmatmul.mubr.msk.bf16.vlgmr.msra.gmra.mxu0 %vm110_vm1, %v2191_v62 }
 0x3bf   :  { %v1923_v48 = vpop.f32.mrf.mxu1  ;;  %3174 = vmatpush3.bf16.msra.mxu0 %v3256_v61  ;;  %3177 = vmatprep.mubr.msk.bf16.mxu0 %vm3347_vm0, %v3346_v1  ;;  %p3331_p3 = por %p3330_p2, %p3329_p1 }
 0x3c0   :  { %v1964_v2 = vpop.f32.mrf.mxu0  ;;  %v2192_v6 = vpack.c.bf16 %v1923_v48, %v1920_v58  ;;  %3175 = vmatprep.subr.bf16.mxu0 %v3346_v1 }
 0x3c1   :  { %v3120_v7 = vpop.f32.mrf.mxu1  ;;  %p3332_p4 = pnand %p3331_p3, %p3325_p0 }
 0x3c2   :  { %v3125_v12 = vpop.f32.mrf.mxu0  ;;  %3170 = vmatmul.mubr.msk.bf16.vlgmr.msra.gmra.mxu1 %vm110_vm1, %v2192_v6 }
 0x3c3   :  { %3176 = vmatpush3.bf16.msra.mxu0 %v3257_v3  ;;  %3182 = vmatpush3.bf16.msra.mxu1 %v3258_v5 }
 0x3c4   :  { %v1967_v21 = vpop.f32.mrf.mxu0  ;;  %v2008_v10 = vpop.f32.mrf.mxu1  ;;  %3183 = vmatprep.subr.bf16.mxu1 %v3346_v1  ;;  %3189 = vmatprep.subr.bf16.mxu0 %v3346_v1 }
 0x3c5   :  { %v2193_v49 = vpack.c.bf16 %v1967_v21, %v1964_v2  ;;  %3185 = vmatprep.mubr.msk.bf16.mxu1 %vm3347_vm0, %v3346_v1 }
 0x3c6   :  { %v3126_v50 = vpop.f32.mrf.mxu0  ;;  %v3131_v51 = vpop.f32.mrf.mxu1 }
 0x3c7   :  { %3178 = vmatmul.mubr.msk.bf16.vlgmr.msra.gmra.mxu0 %vm110_vm1, %v2193_v49  ;;  %3184 = vmatpush3.bf16.msra.mxu1 %v3259_v9 }
 0x3c8   :  { %3190 = vmatpush3.bf16.msra.mxu0 %v3252_v41  ;;  %v2011_v25 = vpop.f32.mrf.mxu1  ;;  %v2052_v15 = vpop.f32.mrf.mxu0  ;;  %3197 = vmatprep.subr.bf16.mxu1 %v3346_v1 }
 0x3c9   :  { %3191 = vmatprep.subr.bf16.mxu0 %v3346_v1  ;;  %v2194_v59 = vpack.c.bf16 %v2011_v25, %v2008_v10  ;;  %3193 = vmatprep.mubr.msk.bf16.mxu0 %vm3347_vm0, %v3346_v1 }
 0x3ca   :  { %v3132_v30 = vpop.f32.mrf.mxu1  ;;  %v3137_v53 = vpop.f32.mrf.mxu0 }
 0x3cb   :  { %3186 = vmatmul.mubr.msk.bf16.vlgmr.msra.gmra.mxu1 %vm110_vm1, %v2194_v59 }
 0x3cc   :  { %3192 = vmatpush3.bf16.msra.mxu0 %v3253_v40  ;;  %v2055_v16 = vpop.f32.mrf.mxu0  ;;  %v2096_v45 = vpop.f32.mrf.mxu1  ;;  %3198 = vmatpush3.bf16.msra.mxu1 %v3254_v46 }
 0x3cd   :  { %3205 = vmatprep.subr.bf16.mxu0 %v3346_v1  ;;  %v2195_v44 = vpack.c.bf16 %v2055_v16, %v2052_v15  ;;  %3199 = vmatprep.subr.bf16.mxu1 %v3346_v1 }
 0x3ce   :  { %3201 = vmatprep.mubr.msk.bf16.mxu1 %vm3347_vm0, %v3346_v1  ;;  %v3138_v60 = vpop.f32.mrf.mxu0  ;;  %v3143_v13 = vpop.f32.mrf.mxu1 }
 0x3cf   :  { %3194 = vmatmul.mubr.msk.bf16.vlgmr.msra.gmra.mxu0 %vm110_vm1, %v2195_v44 }
 0x3d0   :  { %v2099_v17 = vpop.f32.mrf.mxu1  ;;  %v2140_v19 = vpop.f32.mrf.mxu0  ;;  %3200 = vmatpush3.bf16.msra.mxu1 %v3255_v36  ;;  %3206 = vmatpush3.bf16.msra.mxu0 %v3256_v61 }
 0x3d1   :  { %v2196_v26 = vpack.c.bf16 %v2099_v17, %v2096_v45  ;;  %3207 = vmatprep.subr.bf16.mxu0 %v3346_v1  ;;  %3213 = vmatprep.subr.bf16.mxu1 %v3346_v1 }
 0x3d2   :  { %v3144_v37 = vpop.f32.mrf.mxu1  ;;  %v3149_v18 = vpop.f32.mrf.mxu0  ;;  %3209 = vmatprep.mubr.msk.bf16.mxu0 %vm3347_vm0, %v3346_v1 }
 0x3d3   :  { %3202 = vmatmul.mubr.msk.bf16.vlgmr.msra.gmra.mxu1 %vm110_vm1, %v2196_v26 }
 0x3d4   :  { %v2143_v22 = vpop.f32.mrf.mxu0  ;;  %v2184_v24 = vpop.f32.mrf.mxu1  ;;  %3208 = vmatpush3.bf16.msra.mxu0 %v3257_v3  ;;  %3214 = vmatpush3.bf16.msra.mxu1 %v3258_v5 }
 0x3d5   :  { %v2197_v63 = vpack.c.bf16 %v2143_v22, %v2140_v19  ;;  %3215 = vmatprep.subr.bf16.mxu1 %v3346_v1  ;;  %3217 = vmatprep.mubr.msk.bf16.mxu1 %vm3347_vm0, %v3346_v1 }
 0x3d6   :  { %v3150_v56 = vpop.f32.mrf.mxu0  ;;  %v3155_v43 = vpop.f32.mrf.mxu1 }
 0x3d7   :  { %3210 = vmatmul.mubr.msk.bf16.vlgmr.msra.gmra.mxu0 %vm110_vm1, %v2197_v63 }
 0x3d8   :  { %v2187_v4 = vpop.f32.mrf.mxu1  ;;  %3216 = vmatpush3.bf16.msra.mxu1 %v3259_v9 }
 0x3d9   :  { %v2198_v23 = vpack.c.bf16 %v2187_v4, %v2184_v24 }
 0x3da   :  { %v3156_v27 = vpop.f32.mrf.mxu1 }
 0x3db   :  { %3218 = vmatmul.mubr.msk.bf16.vlgmr.msra.gmra.mxu1 %vm110_vm1, %v2198_v23 }
 0x47e   :  { %v2248_v29 = vpop.f32.mrf.mxu0 }
 0x47f   :  { %v2599_v20 = vsel %vm110_vm1, %v2248_v29, 0.0 }
 0x480   :  { %v3163_v8 = vpop.f32.mrf.mxu0 }
 0x482   :  { %v2251_v38 = vpop.f32.mrf.mxu0  ;;  %v2304_v14 = vpop.f32.mrf.mxu1 }
 0x483   :  { %v2600_v32 = vsel %vm110_vm1, %v2304_v14, 0.0  ;;  %v2606_v46 = vsel %vm110_vm1, %v2251_v38, 0.0 }
 0x484   :  { %v3164_v52 = vpop.f32.mrf.mxu0  ;;  %v3171_v28 = vpop.f32.mrf.mxu1  ;;  %v2601_v42 = vadd.f32 %v2600_v32, %v2599_v20 }
 0x486   :  { %v2307_v34 = vpop.f32.mrf.mxu1 }
 0x487   :  { %v2360_v1 = vpop.f32.mrf.mxu0  ;;  %v2607_v0 = vsel %vm110_vm1, %v2307_v34, 0.0 }
 0x488   :  { %v2602_v47 = vsel %vm110_vm1, %v2360_v1, 0.0  ;;  %v3172_v33 = vpop.f32.mrf.mxu1  ;;  %v2608_v58 = vadd.f32 %v2607_v0, %v2606_v46 }
 0x489   :  { %v3179_v39 = vpop.f32.mrf.mxu0  ;;  %v2603_v41 = vadd.f32 %v2602_v47, %v2601_v42 }
 0x48b   :  { %v2363_v31 = vpop.f32.mrf.mxu0  ;;  %v2416_v40 = vpop.f32.mrf.mxu1 }
 0x48c   :  { %v2609_v36 = vsel %vm110_vm1, %v2363_v31, 0.0  ;;  %v2604_v35 = vsel %vm110_vm1, %v2416_v40, 0.0 }
 0x48d   :  { %v3180_v57 = vpop.f32.mrf.mxu0  ;;  %v2605_v61 = vadd.f32 %v2604_v35, %v2603_v41  ;;  %v3187_v62 = vpop.f32.mrf.mxu1  ;;  %v2610_v55 = vadd.f32 %v2609_v36, %v2608_v58 }
 0x48f   :  { %v2634_v11 = vadd.f32 %v2740_v54, %v2605_v61  ;;  %v2419_v48 = vpop.f32.mrf.mxu1  ;;  %v2460_v2 = vpop.f32.mrf.mxu0 }
 0x490   :  { %v2611_v3 = vsel %vm110_vm1, %v2419_v48, 0.0  ;;  %v2613_v15 = vsel %vm110_vm1, %v2460_v2, 0.0 }
 0x491   :  { %2638 = vst.msk [vmem:[#allocation2] sm:$0xff] %vm110_vm1, %v2634_v11  ;;  %v2612_v5 = vadd.f32 %v2611_v3, %v2610_v55  ;;  %v3188_v6 = vpop.f32.mrf.mxu1  ;;  %v3195_v7 = vpop.f32.mrf.mxu0 }
 0x493   :  { %v2635_v12 = vadd.f32 %v2740_v54, %v2612_v5  ;;  %v2463_v21 = vpop.f32.mrf.mxu0  ;;  %v2504_v9 = vpop.f32.mrf.mxu1 }
 0x494   :  { %v2614_v50 = vsel %vm110_vm1, %v2504_v9, 0.0  ;;  %v2620_v17 = vsel %vm110_vm1, %v2463_v21, 0.0 }
 0x495   :  { %2639 = vst.msk [vmem:[#allocation2 + $0x8] sm:$0xff] %vm110_vm1, %v2635_v12  ;;  %v3196_v49 = vpop.f32.mrf.mxu0  ;;  %v3203_v10 = vpop.f32.mrf.mxu1  ;;  %v2615_v30 = vadd.f32 %v2614_v50, %v2613_v15 }
 0x497   :  { %v2507_v51 = vpop.f32.mrf.mxu1  ;;  %v2548_v25 = vpop.f32.mrf.mxu0 }
 0x498   :  { %v2616_v59 = vsel %vm110_vm1, %v2548_v25, 0.0  ;;  %v2621_v45 = vsel %vm110_vm1, %v2507_v51, 0.0 }
 0x499   :  { %v3204_v53 = vpop.f32.mrf.mxu1  ;;  %v3211_v16 = vpop.f32.mrf.mxu0  ;;  %v2617_v44 = vadd.f32 %v2616_v59, %v2615_v30  ;;  %v2622_v37 = vadd.f32 %v2621_v45, %v2620_v17 }
 0x49b   :  { %v2551_v60 = vpop.f32.mrf.mxu0  ;;  %v2592_v13 = vpop.f32.mrf.mxu1 }
 0x49c   :  { %v2623_v19 = vsel %vm110_vm1, %v2551_v60, 0.0  ;;  %v2618_v26 = vsel %vm110_vm1, %v2592_v13, 0.0 }
 0x49d   :  { %v2619_v18 = vadd.f32 %v2618_v26, %v2617_v44  ;;  %v3212_v22 = vpop.f32.mrf.mxu0  ;;  %v3219_v24 = vpop.f32.mrf.mxu1  ;;  %v2624_v63 = vadd.f32 %v2623_v19, %v2622_v37 }
 0x49f   :  { %v2636_v56 = vadd.f32 %v2740_v54, %v2619_v18  ;;  %v2595_v43 = vpop.f32.mrf.mxu1 }
 0x4a0   :  { %v2625_v4 = vsel %vm110_vm1, %v2595_v43, 0.0 }
 0x4a1   :  { %2640 = vst.msk [vmem:[#allocation2 + $0x10] sm:$0xff] %vm110_vm1, %v2636_v56  ;;  %v2626_v23 = vadd.f32 %v2625_v4, %v2624_v63  ;;  %v3220_v27 = vpop.f32.mrf.mxu1 }
 0x4a3   :  { %v2637_v29 = vadd.f32 %v2740_v54, %v2626_v23 }
 0x4a5   :  { %2641 = vst.msk [vmem:[#allocation2 + $0x18] sm:$0xff] %vm110_vm1, %v2637_v29 }
 0x4a6   :  { %3335 = shalt.err (!%p3332_p4)
}
 0x4a7   :  { %s3349_s13 = smov 128   ;;  %s3350_s14 = smov 8  }
 0x4a8   :  { %2653 = dma.vmem_to_hbm [thread:$0]  %s2648_s11, 512, %s4024_s6, [#allocation3], %s3349_s13, %s3349_s13, %s3350_s14  }
 0x4a9   :  { %3344 = dma.done.wait [#allocation3], 512  }
 0x4aa   :  { %3345 = vsyncadd [#allocation3], 4294966784 }
 0x4ab   :  { %2657 = vsyncpa [#allocation3], 1 }

</bundles_post_ra>
